<compile_context>
chip_gen: v7x
topology: tpu7x:2x2x1
jax: 0.10.0
libtpu: 0.0.40
codegen_flags: <defaults>
</compile_context>

<pallas_src>
import functools

import jax
import jax.numpy as jnp
from jax.experimental import pallas as pl
from jax.experimental.pallas import tpu as pltpu

EPS = 1e-5        # PyTorch BatchNorm1d default eps
LANE = 128        # TPU lane width
SUBLANE = 8       # TPU sublane width
NC = 2            # leading "parallel" grid axis: per-core stats partials (v7x)


def _round_up(x, m):
    return ((x + m - 1) // m) * m


def _pad2d(a, rows, cols):
    pr, pc = rows - a.shape[0], cols - a.shape[1]
    if pr or pc:
        a = jnp.pad(a, ((0, pr), (0, pc)))
    return a


def _vmem_limit_bytes():
    """Generation-aware scoped-VMEM budget: ~48 MiB on v7x (64 MiB physical),
    ~96 MiB on v5e/v6e (128 MiB physical)."""
    cap = 64 * 1024 * 1024
    try:
        info_cap = int(pltpu.get_tpu_info().vmem_capacity_bytes)
        if 16 * 1024 * 1024 <= info_cap <= 256 * 1024 * 1024:
            cap = info_cap
    except Exception:
        pass
    return min(cap * 3 // 4, 100 * 1024 * 1024)


# --------------------------------------------------------------------------
# Kernels
# --------------------------------------------------------------------------
def _fused_kernel(relu, mask, tile_r, n_rows, t_per_core, first_pad_tile,
                  x_ref, sc_ref, w_ref, y_ref, stats_ref):
    """One row tile of:  h = [relu](x*scale + shift);  y = h @ w  (bf16 MXU,
    f32 acc); write pre-BN y (bf16) and accumulate this core's per-channel
    sum / sum(y^2) partials."""
    c = pl.program_id(0)          # core-partial ("parallel") axis
    s = pl.program_id(1)          # row-tile ("arbitrary") axis

    h = x_ref[...].astype(jnp.float32) * sc_ref[0:1, :] + sc_ref[1:2, :]
    if relu:
        h = jnp.maximum(h, 0.0)
    y = jnp.dot(h.astype(jnp.bfloat16), w_ref[...],
                preferred_element_type=jnp.float32)
    y_ref[...] = y.astype(y_ref.dtype)

    @pl.when(s == 0)
    def _():
        stats_ref[...] = jnp.zeros_like(stats_ref)

    def _acc(v):
        stats_ref[0:1, :] += jnp.sum(v, axis=0, keepdims=True)
        stats_ref[1:2, :] += jnp.sum(v * v, axis=0, keepdims=True)

    if mask:
        # Only the tiles that actually contain padded rows pay for the
        # iota/compare/select; all other tiles accumulate unmasked.
        t = c * t_per_core + s
        @pl.when(t < first_pad_tile)
        def _():
            _acc(y)

        @pl.when(t >= first_pad_tile)
        def _():
            rid = t * tile_r + jax.lax.broadcasted_iota(jnp.int32, y.shape, 0)
            _acc(jnp.where(rid < n_rows, y, 0.0))
    else:
        _acc(y)


def _bn_apply_kernel(relu, x_ref, sc_ref, o_ref):
    """Final BN apply: out = [relu](y*scale + shift)."""
    y = x_ref[...].astype(jnp.float32) * sc_ref[0:1, :] + sc_ref[1:2, :]
    if relu:
        y = jnp.maximum(y, 0.0)
    o_ref[...] = y.astype(o_ref.dtype)


# --------------------------------------------------------------------------
# XLA glue: fold batch statistics + gamma/beta into one (2, C) scale/shift.
# --------------------------------------------------------------------------
def _scale_shift(stats, gamma, beta, inv_r, cout, cout_p):
    tot = jnp.sum(stats, axis=0)                       # reduce per-core partials
    mean = tot[0:1, :] * inv_r
    var = jnp.maximum(tot[1:2, :] * inv_r - mean * mean, 0.0)
    g = jnp.zeros((1, cout_p), jnp.float32).at[0, :cout].set(gamma.reshape(-1))
    b = jnp.zeros((1, cout_p), jnp.float32).at[0, :cout].set(beta.reshape(-1))
    scale = g * jax.lax.rsqrt(var + EPS)               # gamma / std (0 on padding)
    shift = b - mean * scale                           # beta - mean*scale
    return jnp.concatenate([scale, shift], axis=0)     # (2, cout_p)


# --------------------------------------------------------------------------
# Wrapper
# --------------------------------------------------------------------------
def mlp_forward(x_ncl, params, use_final_activation=False, tile_rows=2048):
    """params: list of (w (Cin,Cout), b (1,Cout), gamma (1,Cout), beta (1,Cout)).

    Conv bias `b` is accepted for API compatibility but unused: a per-channel
    constant added before training-mode BatchNorm is cancelled exactly by the
    mean subtraction.
    """
    # TODO(synk): `return_all=True` (returning every intermediate activation)
    # is not wired through; only the final output is produced.
    B, C_in, L = x_ncl.shape
    R = B * L
    inv_r = 1.0 / R
    vmem_limit = _vmem_limit_bytes()

    # Channel padding plan: weights / inter-layer slabs lane-dense (128-padded,
    # zero-filled); the layer-0 input slab stays narrow (sublane-aligned) in HBM.
    cin0_p = _round_up(C_in, SUBLANE)
    couts = [w.shape[1] for (w, _, _, _) in params]
    couts_p = [_round_up(c, LANE) for c in couts]
    cins_p = [cin0_p] + couts_p[:-1]

    # Row tiling: biggest tile that fits the VMEM budget (double-buffered bf16
    # in+out blocks), but keep the grid >= 2*NC steps so both v7x TensorCores
    # get work and each core's pipeline stays >= 2 deep.
    R8 = _round_up(R, SUBLANE)
    max_pair = max(ci + co for ci, co in zip(cins_p, couts_p))
    tile_cap = max(SUBLANE,
                   ((vmem_limit // 2) // (4 * max_pair)) // SUBLANE * SUBLANE)
    tile_r = min(_round_up(tile_rows, SUBLANE), tile_cap, R8)
    if pl.cdiv(R8, tile_r) < 2 * NC:
        tile_r = max(SUBLANE, _round_up(pl.cdiv(R8, 2 * NC), SUBLANE))
    n_tiles = _round_up(pl.cdiv(R8, tile_r), NC)
    t_per_core = n_tiles // NC
    R_pad = n_tiles * tile_r
    mask = R_pad > R
    first_pad_tile = R // tile_r          # first row tile containing padded rows
    grid = (NC, t_per_core)

    row_map = lambda c, s: (c * t_per_core + s, 0)
    bcast_map = lambda c, s: (0, 0)
    stats_map = lambda c, s: (c, 0, 0)

    # NCL -> channels-last row slab (rows zero-padded), bf16 for the MXU.
    # TODO(synk): fold this transpose into the first kernel's BlockSpec to save
    # one XLA pass over the input.
    x2d = jnp.transpose(x_ncl, (0, 2, 1)).reshape(R, C_in)
    h = _pad2d(x2d, R_pad, cin0_p).astype(jnp.bfloat16)

    # Layer 0 has no preceding BN: identity scale/shift.
    sc = jnp.concatenate([jnp.ones((1, cin0_p), jnp.float32),
                          jnp.zeros((1, cin0_p), jnp.float32)], axis=0)
    relu_in = False

    for i, (w, b, gamma, beta) in enumerate(params):
        cin_p, cout_p = cins_p[i], couts_p[i]
        w_p = _pad2d(w.astype(jnp.float32), cin_p, cout_p).astype(jnp.bfloat16)

        flops = 2 * R_pad * cin_p * cout_p
        bytes_acc = (R_pad * cin_p * 2 + 2 * cin_p * 4 + cin_p * cout_p * 2
                     + R_pad * cout_p * 2 + NC * 2 * cout_p * 4)

        # Fused: apply BN_{i-1} (+ReLU) to the incoming slab, matmul with w_i,
        # write pre-BN y_{i+1} (bf16), accumulate per-core stats for BN_i.
        h, stats = pl.pallas_call(
            functools.partial(_fused_kernel, relu_in, mask, tile_r, R,
                              t_per_core, first_pad_tile),
            grid=grid,
            in_specs=[pl.BlockSpec((tile_r, cin_p), row_map),
                      pl.BlockSpec((2, cin_p), bcast_map),
                      pl.BlockSpec((cin_p, cout_p), bcast_map)],
            out_specs=[pl.BlockSpec((tile_r, cout_p), row_map),
                       pl.BlockSpec((None, 2, cout_p), stats_map)],
            out_shape=(jax.ShapeDtypeStruct((R_pad, cout_p), jnp.bfloat16),
                       jax.ShapeDtypeStruct((NC, 2, cout_p), jnp.float32)),
            compiler_params=pltpu.CompilerParams(
                dimension_semantics=("parallel", "arbitrary"),
                vmem_limit_bytes=vmem_limit),
            cost_estimate=pl.CostEstimate(flops=flops, transcendentals=0,
                                          bytes_accessed=bytes_acc),
        )(h, sc, w_p)

        # Tiny XLA glue: reduce NC per-core partials, fold BN_i into (2, C).
        sc = _scale_shift(stats, gamma, beta, inv_r, couts[i], cout_p)
        relu_in = True        # every hidden layer is followed by ReLU

    # Final BN apply (+ optional activation).  No masking: padded rows are
    # sliced off below and feed no further statistics.
    cn, cn_p = couts[-1], couts_p[-1]
    out = pl.pallas_call(
        functools.partial(_bn_apply_kernel, bool(use_final_activation)),
        grid=(n_tiles,),
        in_specs=[pl.BlockSpec((tile_r, cn_p), lambda t: (t, 0)),
                  pl.BlockSpec((2, cn_p), lambda t: (0, 0))],
        out_specs=pl.BlockSpec((tile_r, cn_p), lambda t: (t, 0)),
        out_shape=jax.ShapeDtypeStruct((R_pad, cn_p), jnp.float32),
        compiler_params=pltpu.CompilerParams(
            dimension_semantics=("parallel",),
            vmem_limit_bytes=vmem_limit),
        cost_estimate=pl.CostEstimate(
            flops=2 * R_pad * cn_p, transcendentals=0,
            bytes_accessed=R_pad * cn_p * 2 + 2 * cn_p * 4 + R_pad * cn_p * 4),
    )(h, sc)

    y2d = out[:R, :cn]                               # drop row/channel padding
    return jnp.transpose(y2d.reshape(B, L, cn), (0, 2, 1))


# --------------------------------------------------------------------------
# Pure-JAX reference mirroring the kernel's precision policy (bf16 MXU
# operands, bf16 pre-BN slabs, f32 accumulation / BN math); reproduces the
# PyTorch module's train() forward (conv bias cancelled by BN mean-subtract).
# --------------------------------------------------------------------------
def _reference_forward(x_ncl, params, use_final_activation=False):
    B, C, L = x_ncl.shape
    n = len(params)
    h = jnp.transpose(x_ncl, (0, 2, 1)).reshape(B * L, C).astype(jnp.bfloat16)
    out = None
    for i, (w, b, gamma, beta) in enumerate(params):
        y = jnp.dot(h, w.astype(jnp.bfloat16),
                    preferred_element_type=jnp.float32)
        mean = jnp.mean(y, axis=0, keepdims=True)
        var = jnp.maximum(jnp.mean(y * y, axis=0, keepdims=True) - mean * mean,
                          0.0)
        scale = gamma * jax.lax.rsqrt(var + EPS)
        shift = beta - mean * scale
        a = y.astype(jnp.bfloat16).astype(jnp.float32) * scale + shift
        if i < n - 1 or use_final_activation:
            a = jnp.maximum(a, 0.0)
        if i < n - 1:
            h = a.astype(jnp.bfloat16)
        else:
            out = a
    cout = params[-1][0].shape[1]
    return jnp.transpose(out.reshape(B, L, cout), (0, 2, 1))


if __name__ == "__main__":
    key = jax.random.PRNGKey(0)

    B, C_IN, L = 2, 4, 16
    layer_sizes = (32, 16, 8)
    use_final_activation = False

    # Deterministic parameter init (Conv1d weight/bias; BN gamma=1, beta=0).
    params = []
    cin = C_IN
    for cout in layer_sizes:
        key, kw, kb = jax.random.split(key, 3)
        w = jax.random.normal(kw, (cin, cout), jnp.float32) * 0.1
        b = jax.random.normal(kb, (1, cout), jnp.float32) * 0.1
        gamma = jnp.ones((1, cout), jnp.float32)
        beta = jnp.zeros((1, cout), jnp.float32)
        params.append((w, b, gamma, beta))
        cin = cout

    key, kx = jax.random.split(key)
    x = jax.random.normal(kx, (B, C_IN, L), jnp.float32)  # NCL, like PyTorch

    out = mlp_forward(x, params, use_final_activation)
    out = jax.block_until_ready(out)

    ref = _reference_forward(x, params, use_final_activation)
    assert out.shape == (B, layer_sizes[-1], L), out.shape
    max_diff = float(jnp.max(jnp.abs(out - ref)))
    assert jnp.allclose(out, ref, atol=1e-2, rtol=1e-2), f"mismatch: {max_diff}"

    print("KERNEL_OK")
</pallas_src>

<mosaic_0001>
module attributes {stable_mosaic.version = 11 : i64} {
  func.func @_fused_kernel(%arg0: i32, %arg1: i32, %arg2: memref<8x8xbf16, #tpu.memory_space<vmem>>, %arg3: memref<2x8xf32, #tpu.memory_space<vmem>>, %arg4: memref<8x128xbf16, #tpu.memory_space<vmem>>, %arg5: memref<8x128xbf16, #tpu.memory_space<vmem>>, %arg6: memref<1x2x128xf32, #tpu.memory_space<vmem>>) attributes {dimension_semantics = [#tpu.dimension_semantics<parallel>, #tpu.dimension_semantics<arbitrary>], iteration_bounds = array<i64: 2, 2>, scalar_prefetch = 0 : i64, scratch_operands = 0 : i64, tpu.core_type = #tpu.core_type<tc>, window_params = [{transform_indices = @transform_0, window_bounds = array<i64: 8, 8>}, {pipeline_mode = #tpu.pipeline_mode<synchronous>, transform_indices = @transform_1, window_bounds = array<i64: 2, 8>}, {pipeline_mode = #tpu.pipeline_mode<synchronous>, transform_indices = @transform_2, window_bounds = array<i64: 8, 128>}, {transform_indices = @transform_3, window_bounds = array<i64: 8, 128>}, {transform_indices = @transform_4, window_bounds = array<i64: 1, 2, 128>}]} {
    %c0 = arith.constant 0 : index
    %c0_0 = arith.constant 0 : index
    %0 = vector.load %arg2[%c0, %c0_0] : memref<8x8xbf16, #tpu.memory_space<vmem>>, vector<8x8xbf16>
    %1 = arith.extf %0 : vector<8x8xbf16> to vector<8x8xf32>
    %c0_1 = arith.constant 0 : index
    %c0_2 = arith.constant 0 : index
    %2 = vector.load %arg3[%c0_1, %c0_2] : memref<2x8xf32, #tpu.memory_space<vmem>>, vector<1x8xf32>
    %3 = vector.broadcast %2 : vector<1x8xf32> to vector<8x8xf32>
    %4 = arith.mulf %1, %3 : vector<8x8xf32>
    %c1 = arith.constant 1 : index
    %c0_3 = arith.constant 0 : index
    %5 = vector.load %arg3[%c1, %c0_3] : memref<2x8xf32, #tpu.memory_space<vmem>>, vector<1x8xf32>
    %6 = vector.broadcast %5 : vector<1x8xf32> to vector<8x8xf32>
    %7 = arith.addf %4, %6 : vector<8x8xf32>
    %8 = arith.truncf %7 : vector<8x8xf32> to vector<8x8xbf16>
    %c0_4 = arith.constant 0 : index
    %c0_5 = arith.constant 0 : index
    %9 = vector.load %arg4[%c0_4, %c0_5] : memref<8x128xbf16, #tpu.memory_space<vmem>>, vector<8x128xbf16>
    %cst = arith.constant dense<0.000000e+00> : vector<8x128xf32>
    %10 = tpu.matmul %8, %9, %cst {dimension_numbers = #tpu.dot_dimension_numbers<[1], [0], [0], [1], [0, 0, 1, 1], [], []>} : vector<8x8xbf16>, vector<8x128xbf16>, vector<8x128xf32> -> vector<8x128xf32>
    %11 = arith.truncf %10 : vector<8x128xf32> to vector<8x128xbf16>
    %c0_6 = arith.constant 0 : index
    %c0_7 = arith.constant 0 : index
    %12 = vector.load %arg5[%c0_6, %c0_7] : memref<8x128xbf16, #tpu.memory_space<vmem>>, vector<8x128xbf16>
    tpu.vector_store %arg5[%c0_6, %c0_7], %11 {strides = array<i32>} : memref<8x128xbf16, #tpu.memory_space<vmem>>, vector<8x128xbf16>,
    %c0_i32 = arith.constant 0 : i32
    %13 = arith.cmpi eq, %arg1, %c0_i32 : i32
    %14 = arith.extui %13 : i1 to i32
    %c0_i32_8 = arith.constant 0 : i32
    %15 = arith.cmpi ne, %14, %c0_i32_8 : i32
    scf.if %15 {
      %cst_23 = arith.constant 0.000000e+00 : f32
      %33 = vector.broadcast %cst_23 : f32 to vector<2x128xf32>
      %c0_24 = arith.constant 0 : index
      %c0_25 = arith.constant 0 : index
      %c0_26 = arith.constant 0 : index
      %34 = vector.load %arg6[%c0_24, %c0_25, %c0_26] : memref<1x2x128xf32, #tpu.memory_space<vmem>>, vector<1x2x128xf32>
      %35 = vector.shape_cast %34 : vector<1x2x128xf32> to vector<2x128xf32>
      %36 = vector.shape_cast %33 : vector<2x128xf32> to vector<1x2x128xf32>
      tpu.vector_store %arg6[%c0_24, %c0_25, %c0_26], %36 {strides = array<i32>} : memref<1x2x128xf32, #tpu.memory_space<vmem>>, vector<1x2x128xf32>,
    } else {
    }
    %c0_9 = arith.constant 0 : index
    %c0_10 = arith.constant 0 : index
    %c0_11 = arith.constant 0 : index
    %16 = vector.load %arg6[%c0_9, %c0_10, %c0_11] : memref<1x2x128xf32, #tpu.memory_space<vmem>>, vector<1x1x128xf32>
    %17 = vector.shape_cast %16 : vector<1x1x128xf32> to vector<1x128xf32>
    %cst_12 = arith.constant dense<0.000000e+00> : vector<128xf32>
    %18 = vector.multi_reduction <add>, %10, %cst_12 [0] : vector<8x128xf32> to vector<128xf32>
    %19 = vector.shape_cast %18 : vector<128xf32> to vector<1x128xf32>
    %20 = arith.addf %17, %19 : vector<1x128xf32>
    %c0_13 = arith.constant 0 : index
    %c0_14 = arith.constant 0 : index
    %c0_15 = arith.constant 0 : index
    %21 = vector.load %arg6[%c0_13, %c0_14, %c0_15] : memref<1x2x128xf32, #tpu.memory_space<vmem>>, vector<1x1x128xf32>
    %22 = vector.shape_cast %21 : vector<1x1x128xf32> to vector<1x128xf32>
    %23 = vector.shape_cast %20 : vector<1x128xf32> to vector<1x1x128xf32>
    tpu.vector_store %arg6[%c0_13, %c0_14, %c0_15], %23 {strides = array<i32>} : memref<1x2x128xf32, #tpu.memory_space<vmem>>, vector<1x1x128xf32>,
    %c0_16 = arith.constant 0 : index
    %c1_17 = arith.constant 1 : index
    %c0_18 = arith.constant 0 : index
    %24 = vector.load %arg6[%c0_16, %c1_17, %c0_18] : memref<1x2x128xf32, #tpu.memory_space<vmem>>, vector<1x1x128xf32>
    %25 = vector.shape_cast %24 : vector<1x1x128xf32> to vector<1x128xf32>
    %26 = arith.mulf %10, %10 : vector<8x128xf32>
    %cst_19 = arith.constant dense<0.000000e+00> : vector<128xf32>
    %27 = vector.multi_reduction <add>, %26, %cst_19 [0] : vector<8x128xf32> to vector<128xf32>
    %28 = vector.shape_cast %27 : vector<128xf32> to vector<1x128xf32>
    %29 = arith.addf %25, %28 : vector<1x128xf32>
    %c0_20 = arith.constant 0 : index
    %c1_21 = arith.constant 1 : index
    %c0_22 = arith.constant 0 : index
    %30 = vector.load %arg6[%c0_20, %c1_21, %c0_22] : memref<1x2x128xf32, #tpu.memory_space<vmem>>, vector<1x1x128xf32>
    %31 = vector.shape_cast %30 : vector<1x1x128xf32> to vector<1x128xf32>
    %32 = vector.shape_cast %29 : vector<1x128xf32> to vector<1x1x128xf32>
    tpu.vector_store %arg6[%c0_20, %c1_21, %c0_22], %32 {strides = array<i32>} : memref<1x2x128xf32, #tpu.memory_space<vmem>>, vector<1x1x128xf32>,
    return
  }
  func.func @transform_0(%arg0: i32, %arg1: i32) -> (i32, i32) {
    %c2_i32 = arith.constant 2 : i32
    %0 = arith.muli %arg0, %c2_i32 : i32
    %1 = arith.addi %0, %arg1 : i32
    %c0_i32 = arith.constant 0 : i32
    %c0_i32_0 = arith.constant 0 : i32
    return %1, %c0_i32 : i32, i32
  }
  func.func @transform_1(%arg0: i32, %arg1: i32) -> (i32, i32) {
    %c0_i32 = arith.constant 0 : i32
    %c0_i32_0 = arith.constant 0 : i32
    %c0_i32_1 = arith.constant 0 : i32
    return %c0_i32, %c0_i32_0 : i32, i32
  }
  func.func @transform_2(%arg0: i32, %arg1: i32) -> (i32, i32) {
    %c0_i32 = arith.constant 0 : i32
    %c0_i32_0 = arith.constant 0 : i32
    %c0_i32_1 = arith.constant 0 : i32
    return %c0_i32, %c0_i32_0 : i32, i32
  }
  func.func @transform_3(%arg0: i32, %arg1: i32) -> (i32, i32) {
    %c2_i32 = arith.constant 2 : i32
    %0 = arith.muli %arg0, %c2_i32 : i32
    %1 = arith.addi %0, %arg1 : i32
    %c0_i32 = arith.constant 0 : i32
    %c0_i32_0 = arith.constant 0 : i32
    return %1, %c0_i32 : i32, i32
  }
  func.func @transform_4(%arg0: i32, %arg1: i32) -> (i32, i32, i32) {
    %c0_i32 = arith.constant 0 : i32
    %c0_i32_0 = arith.constant 0 : i32
    %c0_i32_1 = arith.constant 0 : i32
    return %arg0, %c0_i32, %c0_i32_0 : i32, i32, i32
  }
}

</mosaic_0001>

<bundles_post_ra>
// kernel: tpu_custom_call.1
= control target key start
LH: loop header
LB: loop body
LE: loop exit
PB: predicated region body
PF: predicated region fallthrough
CT: control target
= control target key end

     0   :  { %s1030_s0 = inlined_call_operand.vmem [shape: bf16[32,8], index: 0, kind: input, shape index: {}]   ;;  %s1031_s1 = inlined_call_operand.vmem [shape: f32[2,8], index: 1, kind: input, shape index: {}]   ;;  %s1032_s2 = inlined_call_operand.vmem [shape: bf16[8,128], index: 2, kind: input, shape index: {}]   ;;  %s1033_s3 = inlined_call_operand.hbm [shape: bf16[32,128], index: 3, kind: output, shape index: {0}]   ;;  %s1034_s4 = inlined_call_operand.hbm [shape: f32[2,2,128], index: 4, kind: output, shape index: {1}]  }
   0x1   :  { %1040 = sst [smem:[#allocation12_spill]] %s1030_s0 }
   0x2   :  { %1041 = sst [smem:[#allocation13_spill]] %s1032_s2 }
   0x3   :  { %10 = vsyncpa [#allocation3], 0 }
   0x4   :  { %12 = vsyncpa [#allocation3 + $0x1], 0 }
   0x5   :  { %13 = vsyncpa [#allocation5], 0 }
   0x6   :  { %15 = vsyncpa [#allocation5 + $0x1], 0  ;;  %s782_s15 = smov 0   ;;  %s784_s16 = smov 0  }
   0x7   :  { %s786_s17 = smov 0   ;;  %s788_s18 = smov 0  }
   0x8   :  { %s790_s19 = smov 0   ;;  %s792_s20 = smov 0  }
   0x9   :  { %s794_s21 = smov 0   ;;  %s796_s22 = smov 0  }
   0xa   :  { %s798_s23 = smov 0   ;;  %s800_s24 = smov 0  }
   0xb   :  { %s802_s25 = smov 0  }
   0xc LB: > { %1042 = sst [smem:[#allocation8_spill]] %s742_s23  ;;  %s465_s26 = sadd.s32 4294967295, %s750_s25   ;;  %s750_s25 = sphi %s802_s25, %s21_s25   ;;  %s746_s24 = sphi %s800_s24, %s1066_s24   ;;  %s742_s23 = sphi %s798_s23, %s1057_s23   ;;  %s738_s22 = sphi %s796_s22, %s1065_s22   ;;  %s734_s21 = sphi %s794_s21, %s1056_s21   ;;  %s730_s20 = sphi %s792_s20, %s1064_s20   ;;  %s726_s19 = sphi %s790_s19, %s1063_s19   ;;  %s722_s18 = sphi %s788_s18, %s1062_s18   ;;  %s718_s17 = sphi %s786_s17, %s1061_s17   ;;  %s714_s16 = sphi %s784_s16, %s1060_s16   ;;  %s710_s15 = sphi %s782_s15, %s1059_s15  }
   0xd   : > { %s466_s27 = sadd.s32 4294967294, %s750_s25   ;;  %s30_s28 = sadd.s32 1, %s742_s23 }
   0xe   : > { %s33_s29 = sadd.s32 1, %s746_s24  ;;  %p31_p0 = scmp.ge.s32.totalorder %s30_s28, 2 }
   0xf   : > { %s469_s30 = sshll.u32 %s746_s24, 1  ;;  %s116_s6 = sadd.s32 1, %s730_s20 }
  0x10   : > { %s110_s5 = sadd.s32 %s742_s23, %s469_s30  ;;  %s1068_s28 = smov (%p31_p0, %s30_s28), 0 }
  0x11   : > { %1043 = sst [smem:[#allocation9_spill]] %s1068_s28  ;;  %s1070_s29 = smov (!%p31_p0, %s33_s29), %s746_s24 }
  0x12   : > { %p126_p1 = scmp.ne.s32.totalorder %s730_s20, %s726_s19  ;;  %p849_p2 = scmp.eq.s32.totalorder %s465_s26, 3 }
  0x13   : > { %p35_p3 = scmp.ge.s32.totalorder %s1070_s29, 2  ;;  %p132_p4 = scmp.ne.s32.totalorder %s726_s19, %s722_s18 }
  0x14   : > { %p857_p5 = por %p849_p2, %p126_p1  ;;  %p861_p6 = scmp.eq.s32.totalorder %s466_s27, 3 }
  0x15   : > { %s1072_s29 = smov (%p35_p3, %s1070_s29), 0  ;;  %s142_s11 = sadd.s32 1, %s718_s17 }
  0x16   : > { %1047 = sst [smem:[#allocation10_spill]] %s1072_s29  ;;  %p869_p7 = por %p861_p6, %p132_p4 }
  0x17   : > { %s470_s12 = sshll.u32 %s1072_s29, 1  ;;  %s139_s13 = ssub.s32 %s746_s24, %s1072_s29 }
  0x18   : > { %s1048_s10 = scalar_select %p869_p7, 1, 0 }
  0x19   : > { %s112_s14 = sadd.s32 %s470_s12, %s1068_s28  ;;  %p140_p8 = scmp.eq.s32.totalorder %s139_s13, 0 }
  0x1a   : > { %1049 = sst [smem:[#allocation11_spill]] %s1048_s10  ;;  %s113_s26 = ssub.s32 %s110_s5, %s112_s14 }
  0x1b   : > { %p152_p9 = scmp.ne.s32.totalorder %s718_s17, %s714_s16  ;;  %p114_p10 = scmp.eq.s32.totalorder %s113_s26, 0 }
  0x1c   : > { %p158_p11 = scmp.ne.s32.totalorder %s714_s16, %s710_s15  ;;  %p473_p0 = scmp.ge.s32.totalorder %s750_s25, 1 }
  0x1d   : > { %s883_s27 = scalar_select %p140_p8, %s718_s17, %s142_s11  }
  0x1e   : > { %s886_s30 = scalar_select %p114_p10, %s730_s20, %s116_s6  }
  0x1f   : > { %p890_p12 = por %p152_p9, %p849_p2  ;;  %p896_p13 = por %p158_p11, %p861_p6 }
  0x20   : > { %p194_p1 = scmp.lt.s32.totalorder %s750_s25, 5 }
  0x22   : > { %p195_p3 = pnand %p473_p0, %p194_p1 }
  0x23   : > { %s1037_s5 = sand.u32 (!%p195_p3), 1, %s714_s16   ;;  %s1052_s2 = sld [smem:[#allocation13_spill]] (!%p195_p3)  ;;  %vm257_vm0 = vcmask (!%p195_p3), 1043456   ;;  %v752_v1 = vmov (!%p195_p3), 0.0   ;;  %vm753_vm1 = vmmov (!%p195_p3), 0   ;;  %vm253_vm2 = vcmask (!%p195_p3), 64512  }
  0x24   : > { %198 = sbr.rel (%p195_p3) target bundleno = 320 (0x140), region = 32  ;;  %s908_s9 = sshll.u32 (!%p195_p3), %s1037_s5, 1  ;;  %491 = vmatprep.subr.bf16.mxu0 (!%p195_p3), %v752_v1  ;;  %493 = vmatprep.mubr.msk.bf16.mxu0 (!%p195_p3), %vm753_vm1, %v752_v1  ;;  %v478_v4 = vld [vmem:[%s1031_s1] ss:$0 sm:$0xff] (!%p195_p3)  ;;  %v479_v6 = vld [vmem:[%s1031_s1 + $0x1] ss:$0 sm:$0xff] (!%p195_p3) }
  0x25   : > { %s476_s11 = sshll.u32 (!%p195_p3), %s738_s22, 1  ;;  %s1053_s0 = sld [smem:[#allocation12_spill]] (!%p195_p3) }
  0x26   : > { %s912_s12 = sadd.s32 (!%p195_p3), %s734_s21, %s476_s11  ;;  %s216_s11 = sand.u32 (!%p195_p3), 1, %s726_s19  }
  0x27   : > { %p228_p2 = scmp.lt.s32.totalorder (!%p195_p3), %s912_s12, 3  ;;  %p481_p4 = scmp.ne.s32.totalorder (!%p195_p3), %s734_s21, 0 }
  0x29   : > { %v252_v0 = vld [vmem:[%s1052_s2] sm:$0xf] (!%p195_p3)  ;;  %s927_s2 = scalar_lea.vmem (!%p195_p3), [#allocation4], %s908_s9 }
  0x2a   : > { %v259_v2 = vsel (!%p195_p3), %vm257_vm0, %v252_v0, 0 }
  0x2b   : > { %492 = vmatpush3.bf16.msra.mxu0 %v259_v2  ;;  %s229_s13 = scalar_select %p228_p2, %s912_s12, 3 }
  0x2c   : > { %v754_v15 = vmov (!%p481_p4), 0.0  }
  0x2d   : > { %s477_s14 = sshll.u32 %s229_s13, 2  ;;  %s474_s13 = sshll.u32 %s216_s11, 2  ;;  %307 = vst [vmem:[%s927_s2] sm:$0x3] (!%p481_p4), %v754_v15 }
  0x2e   : > { %s231_s7 = scalar_lea.vmem %s1053_s0, %s477_s14  ;;  %s218_s14 = scalar_lea.vmem [#allocation2], %s474_s13 }
  0x2f   : > { %v237_v3 = vld [vmem:[%s231_s7] sm:$0xf] }
  0x30   : > { %v238_v5 = vunpack.c.l.bf16 %v237_v3 }
  0x32   : > { %v244_v7 = vmul.f32 %v478_v4, %v238_v5 }
  0x34   : > { %v250_v8 = vadd.f32 %v479_v6, %v244_v7 }
  0x36   : > { %v251_v9 = vpack.c.bf16 %v250_v8, %v250_v8 }
  0x38   : > { %494 = vmatmul.mubr.msk.bf16.vlgmr.msra.gmra.mrb[0].mxu0 %vm253_vm2, %v251_v9 }
 0x108   : > { %306 = sbr.rel (%p481_p4) target bundleno = 271 (0x10f), region = 36 }
 0x10b   : > { %v295_v10 = vpop.f32.mrb[0].mxu0 }
 0x10c   : > { %v301_v11 = vpack.c.bf16 %v295_v10, %v295_v10  ;;  %v495_v12 = vpop.f32.mrb[1].mxu0 }
 0x10d   : > { %v298_v13 = vpop.f32.mrb[2].mxu0 }
 0x10e   : > { %302 = vst [vmem:[%s218_s14] sm:$0xf] %v301_v11  ;;  %v496_v14 = vpop.f32.mrb[3].mxu0 }
 0x10f PF: > { %v309_v16 = vrot.slane %v295_v10, 4  ;;  %v318_v17 = vmul.f32 %v295_v10, %v295_v10  ;;  %s485_s28 = sshll.u32 %s912_s12, 6  ;;  %s348_s29 = sshll.u32 %s218_s14, 4  ;;  %s349_s29 = int_to_ptr.vmem [resolvable:$true] %s348_s29 }
 0x110   : > { %s935_s9 = scalar_lea.hbm %s1033_s3, %s485_s28  ;;  %s328_s21 = scalar_lea.sflag [#allocation3], %s216_s11 }
 0x111   : > { %v310_v18 = vadd.f32 %v309_v16, %v295_v10  ;;  %v319_v19 = vrot.slane %v318_v17, 4  ;;  %s600_s6 = scalar_lea.vmem %s349_s29, 64  ;;  %s755_s7 = smov [#allocation2]  }
 0x112   : > { %p601_p6 = scmp.ne.s32.totalorder %s349_s29, %s600_s6  ;;  %s604_s13 = sshll.u32 %s755_s7, 4  ;;  %s605_s13 = int_to_ptr.vmem [resolvable:$false] %s604_s13 }
 0x113   : > { %s606_s0 = scalar_lea.vmem %s605_s13, 128  ;;  %p607_p10 = scmp.lt.s32.totalorder %s349_s29, %s605_s13 }
 0x114   : > { %p602_p8 = pnand %p601_p6, %p857_p5  ;;  %p608_p11 = scmp.lt.s32.totalorder %s606_s0, %s600_s6 }
 0x116   : > { %p603_p9 = pneg %p602_p8  ;;  %p609_p0 = por %p608_p11, %p607_p10 }
 0x118   : > { %p610_p1 = pnand %p609_p0, %p603_p9 }
 0x11a   : > { %613 = shalt.err (!%p610_p1)
}
 0x11b   : > { %s614_s12 = scalar_lea.hbm %s935_s9, 64  ;;  %s618_s28 = scalar_lea.hbm %s1033_s3, 256 }
 0x11c   : > { %p615_p3 = scmp.ne.s32.totalorder %s935_s9, %s614_s12  ;;  %p619_p6 = scmp.lt.u32.totalorder %s935_s9, %s1033_s3 }
 0x11d   : > { %p620_p8 = scmp.lt.u32.totalorder %s618_s28, %s614_s12  ;;  %p622_p10 = scmp.lt.u32.totalorder %s614_s12, %s935_s9 }
 0x11e   : > { %p616_p2 = pnand %p615_p3, %p857_p5 }
 0x11f   : > { %p621_p9 = por %p620_p8, %p619_p6 }
 0x120   : > { %p617_p4 = pneg %p616_p2 }
 0x121   : > { %p623_p11 = por %p622_p10, %p621_p9 }
 0x123   : > { %p624_p0 = pnand %p623_p11, %p617_p4 }
 0x125   : > { %627 = shalt.err (!%p624_p0)
}
 0x126   : > { %497 = dma.vmem_to_hbm [thread:$0]  (%p857_p5), %s349_s29, 64, %s935_s9, %s328_s21   ;;  %v311_v20 = vrot.slane %v310_v18, 2  ;;  %v320_v21 = vadd.f32 %v319_v19, %v318_v17  ;;  %v308_v26 = vld [vmem:[%s927_s2] sm:$0x1]  ;;  %v317_v29 = vld [vmem:[%s927_s2 + $0x1] sm:$0x1] }
 0x127   : > { %s486_s0 = sshll.u32 %s738_s22, 5  ;;  %s361_s8 = sshll.u32 %s927_s2, 4  ;;  %s964_s8 = int_to_ptr.vmem [resolvable:$true] %s361_s8 }
 0x128   : > { %v312_v22 = vadd.f32 %v311_v20, %v310_v18  ;;  %v321_v23 = vrot.slane %v320_v21, 2  ;;  %s962_s21 = scalar_lea.hbm %s1034_s4, %s486_s0  ;;  %s1054_s6 = sand.u32 1, %s714_s16  }
 0x129   : > { %s333_s7 = scalar_lea.sflag [#allocation5], %s1054_s6  ;;  %s628_s13 = scalar_lea.vmem %s964_s8, 32 }
 0x12a   : > { %v313_v24 = vrot.slane %v312_v22, 1  ;;  %v322_v25 = vadd.f32 %v321_v23, %v320_v21  ;;  %p629_p5 = scmp.ne.s32.totalorder %s964_s8, %s628_s13  ;;  %s756_s22 = smov [#allocation4]  }
 0x12b   : > { %s632_s12 = sshll.u32 %s756_s22, 4  ;;  %s633_s12 = int_to_ptr.vmem [resolvable:$false] %s632_s12 }
 0x12c   : > { %v314_v27 = vadd.f32 %v313_v24, %v312_v22  ;;  %v323_v28 = vrot.slane %v322_v25, 1  ;;  %p630_p1 = pnand %p629_p5, %p890_p12  ;;  %s634_s11 = scalar_lea.vmem %s633_s12, 64 }
 0x12d   : > { %p635_p2 = scmp.lt.s32.totalorder %s964_s8, %s633_s12  ;;  %p636_p4 = scmp.lt.s32.totalorder %s634_s11, %s628_s13 }
 0x12e   : > { %v315_v30 = vadd.f32 %v314_v27, %v308_v26  ;;  %v324_v31 = vadd.f32 %v323_v28, %v322_v25  ;;  %p631_p3 = pneg %p630_p1 }
 0x12f   : > { %p637_p6 = por %p636_p4, %p635_p2 }
 0x130   : > { %316 = vst [vmem:[%s927_s2] sm:$0x1] %v315_v30  ;;  %v325_v32 = vadd.f32 %v324_v31, %v317_v29 }
 0x131   : > { %p638_p8 = pnand %p637_p6, %p631_p3 }
 0x132   : > { %326 = vst [vmem:[%s927_s2 + $0x1] sm:$0x1] %v325_v32 }
 0x133   : > { %641 = shalt.err (!%p638_p8)
}
 0x134   : > { %s642_s2 = scalar_lea.hbm %s962_s21, 32  ;;  %s646_s5 = scalar_lea.hbm %s1034_s4, 64 }
 0x135   : > { %p643_p9 = scmp.ne.s32.totalorder %s962_s21, %s642_s2  ;;  %p647_p0 = scmp.lt.u32.totalorder %s962_s21, %s1034_s4 }
 0x136   : > { %p648_p5 = scmp.lt.u32.totalorder %s646_s5, %s642_s2  ;;  %p650_p3 = scmp.lt.u32.totalorder %s642_s2, %s962_s21 }
 0x137   : > { %p644_p10 = pnand %p643_p9, %p890_p12 }
 0x138   : > { %p649_p1 = por %p648_p5, %p647_p0 }
 0x139   : > { %p645_p11 = pneg %p644_p10 }
 0x13a   : > { %p651_p2 = por %p650_p3, %p649_p1 }
 0x13c   : > { %p652_p4 = pnand %p651_p2, %p645_p11 }
 0x13e   : > { %655 = shalt.err (!%p652_p4)
}
 0x13f   : > { %498 = dma.vmem_to_hbm [thread:$0]  (%p890_p12), %s964_s8, 32, %s962_s21, %s333_s7  }
 0x140 PF: > { %p508_p6 = scmp.ge.s32.totalorder %s750_s25, 2  ;;  %s373_s9 = sand.u32 1, %s722_s18  }
 0x141   : > { %s374_s6 = scalar_lea.sflag [#allocation3], %s373_s9 }
 0x142   : > { %p502_p8 = pnand %p508_p6, %p869_p7 }
 0x144   : > { %701 = dma.done.wait (!%p502_p8), %s374_s6, 64  }
 0x145   : > { %703 = vsyncadd (!%p502_p8), %s374_s6, 4294967232  ;;  %s382_s13 = sand.u32 1, %s710_s15   ;;  %p505_p9 = pnand %p508_p6, %p896_p13 }
 0x146   : > { %s383_s23 = scalar_lea.sflag [#allocation5], %s382_s13 }
 0x147   : > { %705 = dma.done.wait (!%p505_p9), %s383_s23, 32  }
 0x148   : > { %707 = vsyncadd (!%p505_p9), %s383_s23, 4294967264  ;;  %s21_s25 = sadd.s32 1, %s750_s25   ;;  %s1056_s21 = sld [smem:[#allocation8_spill]] }
 0x149   : > { %p18_p12 = scmp.ge.s32.totalorder %s21_s25, 6   ;;  %s1057_s23 = sld [smem:[#allocation9_spill]] }
 0x14a   : > { %s1058_s8 = sld [smem:[#allocation10_spill]]  ;;  %s1059_s15 = smov %s714_s16 }
 0x14b   : > { %s1060_s16 = smov %s718_s17  ;;  %s1061_s17 = smov %s883_s27 }
 0x14c   : > { %s1062_s18 = smov %s726_s19  ;;  %s1063_s19 = smov %s730_s20 }
 0x14d   : > { %s1064_s20 = smov %s886_s30  ;;  %s1065_s22 = smov %s746_s24 }
 0x14e   :  { %20 = sbr.rel (!%p18_p12) target bundleno = 12 (0xc), region = 88 }
 0x150   : > { %s1066_s24 = smov %s1058_s8 }
 0x155   :  { %388 = vsyncpa [#allocation3], 1 }
 0x156   :  { %390 = vsyncpa [#allocation3 + $0x1], 1 }
 0x157   :  { %391 = vsyncpa [#allocation5], 1 }
 0x158   :  { %393 = vsyncpa [#allocation5 + $0x1], 1 }

</bundles_post_ra>
